<compile_context>
chip_gen: v6e
topology: v6e:2x2x1
jax: 0.10.0
libtpu: 0.0.40
codegen_flags: <defaults>
</compile_context>

<pallas_src>
import functools

import jax
import jax.numpy as jnp
from jax.experimental import pallas as pl
from jax.experimental.pallas import tpu as pltpu


def _decision_kernel(x_ref, prev_ref, params_ref, out_ref, *, rat_b):
    # x_ref:      [BB, N, T, D]   features for BB batch elements
    # prev_ref:   [BB, N+1, 1]    previous portfolio (row 0 unused)
    # params_ref: [D+3, 3]        rows 0..D-1: feature weights,
    #                             row D: weight of the "previous" column,
    #                             row D+1: bias, row D+2: money scalars
    # out_ref:    [1, BB, N+1]    lane-dense result block
    bb, n, t, d = x_ref.shape

    x_last = x_ref[:, :, t - 1, :]                       # [BB, N, D]
    # Single MXU push over all BB*N rows (demo has N=8, so the merge/split
    # reshapes below are tile-aligned and free).
    x2 = x_last.reshape(bb * n, d)                       # [BB*N, D]

    w_feat = params_ref[:d, :]                           # [D, 3]
    w_prev = params_ref[d:d + 1, :]                      # [1, 3]
    bias = params_ref[d + 1:d + 2, :]                    # [1, 3]
    money = params_ref[d + 2:d + 3, :]                   # [1, 3]

    logits = jnp.dot(x2, w_feat, preferred_element_type=jnp.float32)
    logits = logits.reshape(bb, n, 3)                    # [BB, N, 3]
    prev = prev_ref[:, 1:, :]                            # [BB, N, 1]
    logits = logits + prev * w_prev + bias               # fold prev column + bias

    # Softmax over the asset axis (axis 1), money row handled analytically
    # instead of a sublane concatenate.
    m = jnp.maximum(jnp.max(logits, axis=1, keepdims=True), money)  # [BB,1,3]
    e = jnp.exp(logits - m)                                         # [BB,N,3]
    e_money = jnp.exp(money - m)                                    # [BB,1,3]
    denom = e_money + jnp.sum(e, axis=1, keepdims=True)             # [BB,1,3]
    # approx=True would use the idle EUP vrcp slot; kept exact for 1e-5 tol.
    inv = pl.reciprocal(denom, approx=False)
    p = e * inv                                                     # [BB,N,3]
    p_money = e_money * inv                                         # [BB,1,3]

    if rat_b:
        res_a = p[:, :, 0]                                          # [BB, N]
        res_m = p_money[:, :, 0]                                    # [BB, 1]
    else:
        res_a = p[:, :, 0] - p[:, :, 1] + p[:, :, 2]                # [BB, N]
        res_m = p_money[:, :, 0] - p_money[:, :, 1] + p_money[:, :, 2]

    out_ref[0, :, 0:1] = res_m.astype(out_ref.dtype)
    out_ref[0, :, 1:] = res_a.astype(out_ref.dtype)


def _choose_batch_block(batch, per_batch_bytes, max_bb=128,
                        vmem_budget=6 * 1024 * 1024):
    """Largest BB <= max_bb dividing `batch` whose x-block fits the budget."""
    bb_cap = max(1, min(max_bb, vmem_budget // max(1, per_batch_bytes)))
    g = -(-batch // bb_cap)              # ceil(batch / bb_cap)
    while batch % g != 0:                # grid count must divide batch exactly
        g += 1
    return batch // g, g


def decision_layer_forward(x, previous, w_packed, b_packed, money_packed,
                           rat_b=False):
    """x: [B, N, T, D] f32, previous: [B, N+1, 1] f32.

    w_packed: [D+1, 3], b_packed: [1, 3], money_packed: [1, 3].
    Returns [B, N+1, 1] f32.
    """
    B, N, T, D = x.shape

    # One packed parameter array -> a single tiny input / BlockSpec / DMA.
    params = jnp.concatenate(
        [w_packed.astype(jnp.float32),
         b_packed.reshape(1, 3).astype(jnp.float32),
         money_packed.reshape(1, 3).astype(jnp.float32)], axis=0)   # [D+3, 3]

    per_batch_bytes = N * T * D * 4
    BB, G = _choose_batch_block(B, per_batch_bytes)

    kernel = functools.partial(_decision_kernel, rat_b=rat_b)

    out = pl.pallas_call(
        kernel,
        out_shape=jax.ShapeDtypeStruct((G, BB, N + 1), jnp.float32),
        grid=(G,),
        in_specs=[
            pl.BlockSpec((BB, N, T, D), lambda g: (g, 0, 0, 0)),
            pl.BlockSpec((BB, N + 1, 1), lambda g: (g, 0, 0)),
            pl.BlockSpec((D + 3, 3), lambda g: (0, 0)),
        ],
        out_specs=pl.BlockSpec((1, BB, N + 1), lambda g: (g, 0, 0)),
        compiler_params=pltpu.CompilerParams(
            dimension_semantics=("parallel",),
            vmem_limit_bytes=32 * 1024 * 1024),
    )(x.astype(jnp.float32), previous.astype(jnp.float32), params)

    # Tiny reshape back to the module's output layout.
    return out.reshape(B, N + 1)[:, :, None]


def reference_forward(x, previous, w_packed, b_packed, money_packed,
                      rat_b=False):
    """Pure-JAX reference mirroring the PyTorch forward exactly."""
    B = x.shape[0]
    x_last = x[:, :, -1, :]
    prev = previous[:, 1:, :]
    xc = jnp.concatenate([x_last, prev], axis=2)                  # [B, N, D+1]
    logits = jnp.einsum("bnd,dh->bnh", xc, w_packed) + b_packed   # [B, N, 3]
    money = jnp.broadcast_to(money_packed[None, :, :], (B, 1, 3))
    full = jnp.concatenate([money, logits], axis=1)               # [B, N+1, 3]
    p = jax.nn.softmax(full, axis=1)
    if rat_b:
        return p[..., 0:1]
    return p[..., 0:1] - p[..., 1:2] + p[..., 2:3]


if __name__ == "__main__":
    # small shapes consistent with the module
    B, N_ASSET, T, D_MODEL = 2, 8, 4, 32
    Dp1 = D_MODEL + 1

    key = jax.random.PRNGKey(0)
    k_x, k_prev, k_w, k_b = jax.random.split(key, 4)

    x = jax.random.normal(k_x, (B, N_ASSET, T, D_MODEL), dtype=jnp.float32)
    previous = jax.random.normal(k_prev, (B, N_ASSET + 1, 1), dtype=jnp.float32)

    # deterministic parameter init (nn.Linear-style uniform(-1/sqrt(in), 1/sqrt(in)))
    bound = 1.0 / (Dp1 ** 0.5)
    w_packed = jax.random.uniform(k_w, (Dp1, 3), dtype=jnp.float32,
                                  minval=-bound, maxval=bound)
    b_packed = jax.random.uniform(k_b, (1, 3), dtype=jnp.float32,
                                  minval=-bound, maxval=bound)
    # money / money2 / money3 are initialized to zeros in the module
    money_packed = jnp.zeros((1, 3), dtype=jnp.float32)

    out = decision_layer_forward(x, previous, w_packed, b_packed, money_packed,
                                 rat_b=False)
    out = jax.block_until_ready(out)

    ref = reference_forward(x, previous, w_packed, b_packed, money_packed,
                            rat_b=False)

    assert out.shape == (B, N_ASSET + 1, 1), out.shape
    assert jnp.allclose(out, ref, atol=1e-5, rtol=1e-5), \
        f"max abs err {jnp.max(jnp.abs(out - ref))}"

    # also exercise the rat_b=True path
    out_rb = jax.block_until_ready(
        decision_layer_forward(x, previous, w_packed, b_packed, money_packed,
                               rat_b=True))
    ref_rb = reference_forward(x, previous, w_packed, b_packed, money_packed,
                               rat_b=True)
    assert out_rb.shape == (B, N_ASSET + 1, 1), out_rb.shape
    assert jnp.allclose(out_rb, ref_rb, atol=1e-5, rtol=1e-5), \
        f"max abs err {jnp.max(jnp.abs(out_rb - ref_rb))}"

    print("KERNEL_OK")
</pallas_src>

<mosaic_0001>
module attributes {stable_mosaic.version = 11 : i64} {
  func.func @_decision_kernel(%arg0: i32, %arg1: memref<2x8x4x32xf32, #tpu.memory_space<vmem>>, %arg2: memref<2x9x1xf32, #tpu.memory_space<vmem>>, %arg3: memref<35x3xf32, #tpu.memory_space<vmem>>, %arg4: memref<1x2x9xf32, #tpu.memory_space<vmem>>) attributes {dimension_semantics = [#tpu.dimension_semantics<parallel>], iteration_bounds = array<i64: 1>, scalar_prefetch = 0 : i64, scratch_operands = 0 : i64, tpu.core_type = #tpu.core_type<tc>, window_params = [{transform_indices = @transform_0, window_bounds = array<i64: 2, 8, 4, 32>}, {transform_indices = @transform_1, window_bounds = array<i64: 2, 9, 1>}, {pipeline_mode = #tpu.pipeline_mode<synchronous>, transform_indices = @transform_2, window_bounds = array<i64: 35, 3>}, {transform_indices = @transform_3, window_bounds = array<i64: 1, 2, 9>}]} {
    %c0 = arith.constant 0 : index
    %c0_0 = arith.constant 0 : index
    %c3 = arith.constant 3 : index
    %c0_1 = arith.constant 0 : index
    %0 = vector.load %arg1[%c0, %c0_0, %c3, %c0_1] : memref<2x8x4x32xf32, #tpu.memory_space<vmem>>, vector<2x8x1x32xf32>
    %1 = vector.shape_cast %0 : vector<2x8x1x32xf32> to vector<2x8x32xf32>
    %2 = vector.shape_cast %1 : vector<2x8x32xf32> to vector<16x32xf32>
    %c0_2 = arith.constant 0 : index
    %c0_3 = arith.constant 0 : index
    %3 = vector.load %arg3[%c0_2, %c0_3] : memref<35x3xf32, #tpu.memory_space<vmem>>, vector<32x3xf32>
    %c32 = arith.constant 32 : index
    %c0_4 = arith.constant 0 : index
    %4 = vector.load %arg3[%c32, %c0_4] : memref<35x3xf32, #tpu.memory_space<vmem>>, vector<1x3xf32>
    %c33 = arith.constant 33 : index
    %c0_5 = arith.constant 0 : index
    %5 = vector.load %arg3[%c33, %c0_5] : memref<35x3xf32, #tpu.memory_space<vmem>>, vector<1x3xf32>
    %c34 = arith.constant 34 : index
    %c0_6 = arith.constant 0 : index
    %6 = vector.load %arg3[%c34, %c0_6] : memref<35x3xf32, #tpu.memory_space<vmem>>, vector<1x3xf32>
    %cst = arith.constant dense<0.000000e+00> : vector<16x3xf32>
    %7 = tpu.matmul %2, %3, %cst {dimension_numbers = #tpu.dot_dimension_numbers<[1], [0], [0], [1], [0, 0, 1, 1], [], []>} : vector<16x32xf32>, vector<32x3xf32>, vector<16x3xf32> -> vector<16x3xf32>
    %8 = vector.shape_cast %7 : vector<16x3xf32> to vector<2x8x3xf32>
    %c0_7 = arith.constant 0 : index
    %c1 = arith.constant 1 : index
    %c0_8 = arith.constant 0 : index
    %9 = vector.load %arg2[%c0_7, %c1, %c0_8] : memref<2x9x1xf32, #tpu.memory_space<vmem>>, vector<2x8x1xf32>
    %10 = vector.shape_cast %4 : vector<1x3xf32> to vector<1x1x3xf32>
    %11 = vector.broadcast %9 : vector<2x8x1xf32> to vector<2x8x3xf32>
    %12 = vector.broadcast %10 : vector<1x1x3xf32> to vector<2x8x3xf32>
    %13 = arith.mulf %11, %12 : vector<2x8x3xf32>
    %14 = arith.addf %8, %13 : vector<2x8x3xf32>
    %15 = vector.shape_cast %5 : vector<1x3xf32> to vector<1x1x3xf32>
    %16 = vector.broadcast %15 : vector<1x1x3xf32> to vector<2x8x3xf32>
    %17 = arith.addf %14, %16 : vector<2x8x3xf32>
    %cst_9 = arith.constant dense<0xFF800000> : vector<2x3xf32>
    %18 = vector.multi_reduction <maximumf>, %17, %cst_9 [1] : vector<2x8x3xf32> to vector<2x3xf32>
    %19 = vector.shape_cast %18 : vector<2x3xf32> to vector<2x1x3xf32>
    %20 = vector.shape_cast %6 : vector<1x3xf32> to vector<1x1x3xf32>
    %21 = vector.broadcast %20 : vector<1x1x3xf32> to vector<2x1x3xf32>
    %22 = arith.maximumf %19, %21 : vector<2x1x3xf32>
    %23 = vector.broadcast %22 : vector<2x1x3xf32> to vector<2x8x3xf32>
    %24 = arith.subf %17, %23 : vector<2x8x3xf32>
    %25 = math.exp %24 : vector<2x8x3xf32>
    %26 = vector.shape_cast %6 : vector<1x3xf32> to vector<1x1x3xf32>
    %27 = vector.broadcast %26 : vector<1x1x3xf32> to vector<2x1x3xf32>
    %28 = arith.subf %27, %22 : vector<2x1x3xf32>
    %29 = math.exp %28 : vector<2x1x3xf32>
    %cst_10 = arith.constant dense<0.000000e+00> : vector<2x3xf32>
    %30 = vector.multi_reduction <add>, %25, %cst_10 [1] : vector<2x8x3xf32> to vector<2x3xf32>
    %31 = vector.shape_cast %30 : vector<2x3xf32> to vector<2x1x3xf32>
    %32 = arith.addf %29, %31 : vector<2x1x3xf32>
    %33 = tpu.reciprocal %32 : vector<2x1x3xf32> -> vector<2x1x3xf32>
    %34 = vector.broadcast %33 : vector<2x1x3xf32> to vector<2x8x3xf32>
    %35 = arith.mulf %25, %34 : vector<2x8x3xf32>
    %36 = arith.mulf %29, %33 : vector<2x1x3xf32>
    %37 = vector.extract_strided_slice %35 {offsets = [0, 0, 0], sizes = [2, 8, 1], strides = [1, 1, 1]} : vector<2x8x3xf32> to vector<2x8x1xf32>
    %38 = vector.shape_cast %37 : vector<2x8x1xf32> to vector<2x8xf32>
    %39 = vector.extract_strided_slice %35 {offsets = [0, 0, 1], sizes = [2, 8, 1], strides = [1, 1, 1]} : vector<2x8x3xf32> to vector<2x8x1xf32>
    %40 = vector.shape_cast %39 : vector<2x8x1xf32> to vector<2x8xf32>
    %41 = arith.subf %38, %40 : vector<2x8xf32>
    %42 = vector.extract_strided_slice %35 {offsets = [0, 0, 2], sizes = [2, 8, 1], strides = [1, 1, 1]} : vector<2x8x3xf32> to vector<2x8x1xf32>
    %43 = vector.shape_cast %42 : vector<2x8x1xf32> to vector<2x8xf32>
    %44 = arith.addf %41, %43 : vector<2x8xf32>
    %45 = vector.extract_strided_slice %36 {offsets = [0, 0, 0], sizes = [2, 1, 1], strides = [1, 1, 1]} : vector<2x1x3xf32> to vector<2x1x1xf32>
    %46 = vector.shape_cast %45 : vector<2x1x1xf32> to vector<2x1xf32>
    %47 = vector.extract_strided_slice %36 {offsets = [0, 0, 1], sizes = [2, 1, 1], strides = [1, 1, 1]} : vector<2x1x3xf32> to vector<2x1x1xf32>
    %48 = vector.shape_cast %47 : vector<2x1x1xf32> to vector<2x1xf32>
    %49 = arith.subf %46, %48 : vector<2x1xf32>
    %50 = vector.extract_strided_slice %36 {offsets = [0, 0, 2], sizes = [2, 1, 1], strides = [1, 1, 1]} : vector<2x1x3xf32> to vector<2x1x1xf32>
    %51 = vector.shape_cast %50 : vector<2x1x1xf32> to vector<2x1xf32>
    %52 = arith.addf %49, %51 : vector<2x1xf32>
    %c0_11 = arith.constant 0 : index
    %c0_12 = arith.constant 0 : index
    %c0_13 = arith.constant 0 : index
    %53 = vector.load %arg4[%c0_11, %c0_12, %c0_13] : memref<1x2x9xf32, #tpu.memory_space<vmem>>, vector<1x2x1xf32>
    %54 = vector.shape_cast %53 : vector<1x2x1xf32> to vector<2x1xf32>
    %55 = vector.shape_cast %52 : vector<2x1xf32> to vector<1x2x1xf32>
    tpu.vector_store %arg4[%c0_11, %c0_12, %c0_13], %55 {strides = array<i32>} : memref<1x2x9xf32, #tpu.memory_space<vmem>>, vector<1x2x1xf32>,
    %c0_14 = arith.constant 0 : index
    %c0_15 = arith.constant 0 : index
    %c1_16 = arith.constant 1 : index
    %56 = vector.load %arg4[%c0_14, %c0_15, %c1_16] : memref<1x2x9xf32, #tpu.memory_space<vmem>>, vector<1x2x8xf32>
    %57 = vector.shape_cast %56 : vector<1x2x8xf32> to vector<2x8xf32>
    %58 = vector.shape_cast %44 : vector<2x8xf32> to vector<1x2x8xf32>
    tpu.vector_store %arg4[%c0_14, %c0_15, %c1_16], %58 {strides = array<i32>} : memref<1x2x9xf32, #tpu.memory_space<vmem>>, vector<1x2x8xf32>,
    return
  }
  func.func @transform_0(%arg0: i32) -> (i32, i32, i32, i32) {
    %c0_i32 = arith.constant 0 : i32
    %c0_i32_0 = arith.constant 0 : i32
    %c0_i32_1 = arith.constant 0 : i32
    %c0_i32_2 = arith.constant 0 : i32
    return %arg0, %c0_i32, %c0_i32_0, %c0_i32_1 : i32, i32, i32, i32
  }
  func.func @transform_1(%arg0: i32) -> (i32, i32, i32) {
    %c0_i32 = arith.constant 0 : i32
    %c0_i32_0 = arith.constant 0 : i32
    %c0_i32_1 = arith.constant 0 : i32
    return %arg0, %c0_i32, %c0_i32_0 : i32, i32, i32
  }
  func.func @transform_2(%arg0: i32) -> (i32, i32) {
    %c0_i32 = arith.constant 0 : i32
    %c0_i32_0 = arith.constant 0 : i32
    %c0_i32_1 = arith.constant 0 : i32
    return %c0_i32, %c0_i32_0 : i32, i32
  }
  func.func @transform_3(%arg0: i32) -> (i32, i32, i32) {
    %c0_i32 = arith.constant 0 : i32
    %c0_i32_0 = arith.constant 0 : i32
    %c0_i32_1 = arith.constant 0 : i32
    return %arg0, %c0_i32, %c0_i32_0 : i32, i32, i32
  }
}

</mosaic_0001>

<bundles_post_ra>
// kernel: tpu_custom_call.1
= control target key start
LH: loop header
LB: loop body
LE: loop exit
PB: predicated region body
PF: predicated region fallthrough
CT: control target
= control target key end

     0   :  { %vm55_vm0 = vcmask 1041409   ;;  %vm58_vm1 = vcmask 1042434   ;;  %vm61_vm2 = vcmask 1043459   ;;  %vm64_vm3 = vcmask 1044484   ;;  %s533_s0 = inlined_call_operand.vmem [shape: f32[2,8,4,32], index: 0, kind: input, shape index: {}]   ;;  %s534_s1 = inlined_call_operand.vmem [shape: f32[2,9,1], index: 1, kind: input, shape index: {}]   ;;  %s535_s2 = inlined_call_operand.vmem [shape: f32[35,3], index: 2, kind: input, shape index: {}]   ;;  %s536_s3 = inlined_call_operand.hbm [shape: f32[1,2,9], index: 3, kind: output, shape index: {}]  }
   0x1   :  { %v34_v0 = vld [vmem:[%s535_s2 + $0x18] sm:$0xff]  ;;  %v33_v1 = vld [vmem:[%s535_s2 + $0x10] sm:$0xff]  ;;  %v32_v2 = vld [vmem:[%s535_s2 + $0x8] sm:$0xff]  ;;  %vm67_vm4 = vcmask 1045509   ;;  %vm70_vm5 = vcmask 1046534   ;;  %vm73_vm6 = vcmask 1047559  }
   0x2   :  { %352 = vmatprep.subr.mxu0 %v34_v0  ;;  %v16_v3 = vld [vmem:[%s533_s0 + $0x7] sm:$0x1]  ;;  %v17_v5 = vld [vmem:[%s533_s0 + $0xb] sm:$0x1]  ;;  %v18_v6 = vld [vmem:[%s533_s0 + $0xf] sm:$0x1] }
   0x3   :  { %353 = vmatpush3.msra.mxu0 %v34_v0  ;;  %v31_v4 = vld [vmem:[%s535_s2] sm:$0xff]  ;;  %v19_v7 = vld [vmem:[%s533_s0 + $0x13] sm:$0x1]  ;;  %v20_v9 = vld [vmem:[%s533_s0 + $0x17] sm:$0x1]  ;;  %v54_v12 = vrot.slane %v16_v3, 7 }
   0x4   :  { %354 = vmatprep.subr.mxu0 %v33_v1  ;;  %v15_v8 = vld [vmem:[%s533_s0 + $0x3] sm:$0x1]  ;;  %v21_v10 = vld [vmem:[%s533_s0 + $0x1b] sm:$0x1]  ;;  %v22_v11 = vld [vmem:[%s533_s0 + $0x1f] sm:$0x1] }
   0x5   :  { %355 = vmatpush3.msra.mxu0 %v33_v1  ;;  %v57_v13 = vrot.slane %v17_v5, 6  ;;  %v60_v14 = vrot.slane %v18_v6, 5  ;;  %v63_v15 = vrot.slane %v19_v7, 4  ;;  %v66_v16 = vrot.slane %v20_v9, 3  ;;  %v23_v17 = vld [vmem:[%s533_s0 + $0x23] sm:$0x1] }
   0x6   :  { %356 = vmatprep.subr.mxu0 %v32_v2  ;;  %v24_v18 = vld [vmem:[%s533_s0 + $0x27] sm:$0x1]  ;;  %v56_v19 = vsel %vm55_vm0, %v54_v12, %v15_v8  ;;  %v69_v20 = vrot.slane %v21_v10, 2  ;;  %v25_v21 = vld [vmem:[%s533_s0 + $0x2b] sm:$0x1]  ;;  %v72_v27 = vrot.slane %v22_v11, 1 }
   0x7   :  { %357 = vmatpush3.msra.mxu0 %v32_v2  ;;  %v59_v22 = vsel %vm58_vm1, %v57_v13, %v56_v19  ;;  %v26_v23 = vld [vmem:[%s533_s0 + $0x2f] sm:$0x1]  ;;  %v27_v24 = vld [vmem:[%s533_s0 + $0x33] sm:$0x1]  ;;  %v28_v25 = vld [vmem:[%s533_s0 + $0x37] sm:$0x1] }
   0x8   :  { %358 = vmatprep.subr.mxu0 %v31_v4  ;;  %v62_v26 = vsel %vm61_vm2, %v60_v14, %v59_v22  ;;  %v29_v28 = vld [vmem:[%s533_s0 + $0x3b] sm:$0x1]  ;;  %v75_v29 = vrot.slane %v24_v18, 7  ;;  %v77_v30 = vrot.slane %v25_v21, 6  ;;  %v30_v32 = vld [vmem:[%s533_s0 + $0x3f] sm:$0x1] }
   0x9   :  { %359 = vmatpush3.msra.mxu0 %v31_v4  ;;  %v65_v31 = vsel %vm64_vm3, %v63_v15, %v62_v26  ;;  %v79_v33 = vrot.slane %v26_v23, 5  ;;  %v81_v34 = vrot.slane %v27_v24, 4  ;;  %vm89_vm7 = vcmask 261120   ;;  %v169_v38 = vld [vmem:[%s534_s1 + $0x1] sm:$0xff] }
   0xa   :  { %v68_v35 = vsel %vm67_vm4, %v66_v16, %v65_v31  ;;  %v76_v36 = vsel %vm55_vm0, %v75_v29, %v23_v17  ;;  %v83_v37 = vrot.slane %v28_v25, 3 }
   0xb   :  { %8 = vsyncpa [#allocation3], 0  ;;  %v71_v39 = vsel %vm70_vm5, %v69_v20, %v68_v35  ;;  %v78_v40 = vsel %vm58_vm1, %v77_v30, %v76_v36  ;;  %v85_v41 = vrot.slane %v29_v28, 2  ;;  %v87_v44 = vrot.slane %v30_v32, 1  ;;  %v170_v48 = vld [vmem:[%s534_s1 + $0x11] sm:$0xff]  ;;  %s405_s6 = smov 126  }
   0xc   :  { %v74_v42 = vsel %vm73_vm6, %v72_v27, %v71_v39  ;;  %v80_v43 = vsel %vm61_vm2, %v79_v33, %v78_v40  ;;  %v403_v45 = vmov 0   ;;  %v344_v52 = vld [vmem:[%s535_s2 + $0x20] ss:$0 sm:$0xff]  ;;  %v345_v55 = vld [vmem:[%s535_s2 + $0x21] ss:$0 sm:$0xff]  ;;  %vm195_vm8 = vcmask 23552  }
   0xd   :  { %367 = vset.pattern.permute.xlu0 %v403_v45  ;;  %368 = vset.pattern.permute.xlu1 %v403_v45  ;;  %v82_v46 = vsel %vm64_vm3, %v81_v34, %v80_v43  ;;  %v212_v3 = vlaneseq  ;;  %v37_v12 = vld [vmem:[%s535_s2 + $0x22] sm:$0x1]  ;;  %s404_s2 = smov 127   ;;  %s406_s7 = smov [#allocation2]   ;;  %vm303_vm9 = vcmask 1024   ;;  %vm326_vm10 = vcmask 66568  }
   0xe   :  { %360 = vmatprep.mubr.msk.f32.mxu0 %vm89_vm7, %v74_v42  ;;  %173 = vperm.xlu0 %367, %v169_v38   ;;  %v84_v47 = vsel %vm67_vm4, %v83_v37, %v82_v46  ;;  %s334_s8 = sshll.u32 %s406_s7, 4  ;;  %s335_s8 = int_to_ptr.vmem [resolvable:$true] %s334_s8 }
   0xf   :  { %v86_v49 = vsel %vm70_vm5, %v85_v41, %v84_v47  ;;  %v518_v8 = vshrl.u32 %v212_v3, 7  ;;  %s381_s9 = scalar_lea.vmem %s335_s8, 32  ;;  %p386_p1 = scmp.lt.s32.totalorder %s335_s8, %s335_s8 }
  0x10   :  { %v88_v50 = vsel %vm73_vm6, %v87_v44, %v86_v49  ;;  %p382_p0 = scmp.ne.s32.totalorder %s335_s8, %s381_s9  ;;  %p387_p2 = scmp.lt.s32.totalorder %s381_s9, %s381_s9 }
  0x11   :  { %361 = vmatmul.mubr.msk.f32.vlgmr.msra.gmra.mxu0 %vm89_vm7, %v88_v50  ;;  %v214_v14 = vsub.s32 0, %v518_v8 }
  0x12   :  { %178 = vperm.xlu0 %367, %v170_v48   ;;  %p388_p3 = por %p387_p2, %p386_p1 }
  0x14   :  { %p389_p4 = pnand %p388_p3, %p382_p0 }
  0x89   :  { %v174_v51 = vpop.permute.xlu0 %173 }
  0x8a   :  { %v185_v57 = vmul.f32 %v344_v52, %v174_v51 }
  0x8d   :  { %v179_v53 = vpop.permute.xlu0 %178 }
  0x8e   :  { %v186_v54 = vmul.f32 %v344_v52, %v179_v53 }
  0xd1   :  { %v362_v56 = vpop.f32.mrf.mxu0 }
  0xd2   :  { %v188_v58 = vadd.f32 %v362_v56, %v186_v54 }
  0xd3   :  { %v160_v59 = vpop.f32.mrf.mxu0 }
  0xd4   :  { %v194_v60 = vadd.f32 %v345_v55, %v188_v58  ;;  %v187_v61 = vadd.f32 %v185_v57, %v160_v59 }
  0xd6   :  { %v203_v62 = vsel %vm195_vm8, %v194_v60, -inf  ;;  %v193_v63 = vadd.f32 %v345_v55, %v187_v61 }
  0xd7   :  { %v204_v0 = vrot.slane %v203_v62, 4 }
  0xd8   :  { %v196_v1 = vsel %vm195_vm8, %v193_v63, -inf }
  0xd9   :  { %v205_v2 = vmax.f32 %v203_v62, %v204_v0  ;;  %v197_v4 = vrot.slane %v196_v1, 4 }
  0xdb   :  { %v206_v5 = vrot.slane %v205_v2, 2  ;;  %v198_v6 = vmax.f32 %v196_v1, %v197_v4  ;;  %v314_v4 = vand.u32 127, %v212_v3 }
  0xdd   :  { %v207_v7 = vmax.f32 %v205_v2, %v206_v5  ;;  %v199_v9 = vrot.slane %v198_v6, 2 }
  0xdf   :  { %v208_v10 = vrot.slane %v207_v7, 1  ;;  %v200_v11 = vmax.f32 %v198_v6, %v199_v9  ;;  %v315_v6 = vadd.s32 4294967295, %v314_v4 }
  0xe1   :  { %v209_v13 = vmax.f32 %v207_v7, %v208_v10  ;;  %v201_v15 = vrot.slane %v200_v11, 1  ;;  %v318_v10 = vsub.s32 %v315_v6, %v518_v8 }
  0xe3   :  { %v211_v16 = vmax.f32 %v209_v13, %v37_v12  ;;  %v202_v17 = vmax.f32 %v200_v11, %v201_v15 }
  0xe5   :  { %v219_v18 = vrot.slane %v211_v16, %v214_v14  ;;  %v210_v19 = vmax.f32 %v202_v17, %v37_v12  ;;  %v227_v25 = vsub.f32 %v37_v12, %v211_v16 }
  0xe7   :  { %v221_v20 = vsub.f32 %v194_v60, %v219_v18  ;;  %v215_v21 = vrot.slane %v210_v19, %v214_v14  ;;  %v226_v26 = vsub.f32 %v37_v12, %v210_v19  ;;  %v230_v27 = vmul.f32 1.442695, %v227_v25 }
  0xe9   :  { %v224_v22 = vmul.f32 1.442695, %v221_v20  ;;  %v220_v23 = vsub.f32 %v193_v63, %v215_v21  ;;  %v228_v28 = vmul.f32 1.442695, %v226_v26 }
  0xeb   :  { %369 = vpow2.f32 %v224_v22  ;;  %v222_v24 = vmul.f32 1.442695, %v220_v23 }
  0xed   :  { %371 = vpow2.f32 %v222_v24 }
  0xee   :  { %373 = vpow2.f32 %v230_v27 }
  0xef   :  { %375 = vpow2.f32 %v228_v28 }
  0xf8   :  { %v370_v29 = vpop.eup %369 }
  0xf9   :  { %v239_v30 = vsel %vm195_vm8, %v370_v29, 0.0 }
  0xfa   :  { %v372_v31 = vpop.eup %371  ;;  %v240_v32 = vrot.slane %v239_v30, 4 }
  0xfb   :  { %v232_v33 = vsel %vm195_vm8, %v372_v31, 0.0  ;;  %v374_v44 = vpop.eup %373 }
  0xfc   :  { %v241_v34 = vadd.f32 %v240_v32, %v239_v30  ;;  %v233_v35 = vrot.slane %v232_v33, 4  ;;  %v376_v47 = vpop.eup %375 }
  0xfe   :  { %v242_v36 = vrot.slane %v241_v34, 2  ;;  %v234_v37 = vadd.f32 %v233_v35, %v232_v33 }
 0x100   :  { %v243_v38 = vadd.f32 %v242_v36, %v241_v34  ;;  %v235_v39 = vrot.slane %v234_v37, 2 }
 0x102   :  { %v244_v40 = vrot.slane %v243_v38, 1  ;;  %v236_v41 = vadd.f32 %v235_v39, %v234_v37 }
 0x104   :  { %v245_v42 = vadd.f32 %v244_v40, %v243_v38  ;;  %v237_v43 = vrot.slane %v236_v41, 1 }
 0x106   :  { %v247_v45 = vadd.f32 %v374_v44, %v245_v42  ;;  %v238_v46 = vadd.f32 %v237_v43, %v236_v41 }
 0x108   :  { %377 = vrcp.f32 %v247_v45  ;;  %v246_v48 = vadd.f32 %v376_v47, %v238_v46 }
 0x10a   :  { %379 = vrcp.f32 %v246_v48 }
 0x115   :  { %v378_v49 = vpop.eup %377 }
 0x116   :  { %v257_v50 = vrot.slane %v378_v49, %v214_v14  ;;  %v261_v55 = vmul.f32 %v378_v49, %v374_v44 }
 0x117   :  { %v380_v51 = vpop.eup %379 }
 0x118   :  { %v259_v52 = vmul.f32 %v370_v29, %v257_v50  ;;  %v253_v53 = vrot.slane %v380_v51, %v214_v14  ;;  %v260_v56 = vmul.f32 %v380_v51, %v376_v47 }
 0x11a   :  { %266 = vrot.lane.b32.xlu1 %v259_v52, %s404_s2  ;;  %v258_v54 = vmul.f32 %v372_v31, %v253_v53 }
 0x11c   :  { %272 = vrot.lane.b32.xlu0 %v258_v54, %s405_s6 }
 0x11e   :  { %264 = vrot.lane.b32.xlu1 %v258_v54, %s404_s2 }
 0x120   :  { %284 = vrot.lane.b32.xlu0 %v261_v55, %s404_s2 }
 0x122   :  { %274 = vrot.lane.b32.xlu1 %v259_v52, %s405_s6 }
 0x126   :  { %282 = vrot.lane.b32.xlu1 %v260_v56, %s404_s2 }
 0x18c   :  { %v267_v57 = vpop.permute.xlu1 %266 }
 0x18d   :  { %v271_v61 = vsub.f32 %v259_v52, %v267_v57 }
 0x18e   :  { %v273_v60 = vpop.permute.xlu0 %272 }
 0x190   :  { %v265_v58 = vpop.permute.xlu1 %264 }
 0x191   :  { %v270_v59 = vsub.f32 %v258_v54, %v265_v58 }
 0x192   :  { %v285_v2 = vpop.permute.xlu0 %284 }
 0x193   :  { %v278_v62 = vadd.f32 %v273_v60, %v270_v59  ;;  %v289_v9 = vsub.f32 %v261_v55, %v285_v2 }
 0x194   :  { %v275_v63 = vpop.permute.xlu1 %274 }
 0x195   :  { %v279_v0 = vadd.f32 %v275_v63, %v271_v61  ;;  %308 = vperm.xlu1 %368, %v278_v62  }
 0x197   :  { %311 = vperm.xlu0 %367, %v279_v0  }
 0x198   :  { %v283_v1 = vpop.permute.xlu1 %282 }
 0x199   :  { %290 = vrot.lane.b32.xlu1 %v260_v56, %s405_s6  ;;  %v288_v13 = vsub.f32 %v260_v56, %v283_v1 }
 0x19b   :  { %292 = vrot.lane.b32.xlu0 %v261_v55, %s405_s6 }
 0x210   :  { %v309_v5 = vpop.permute.xlu1 %308 }
 0x211   :  { %v319_v18 = vrot.slane %v309_v5, %v318_v10 }
 0x212   :  { %v312_v7 = vpop.permute.xlu0 %311 }
 0x213   :  { %v323_v15 = vrot.slane %v312_v7, %v318_v10 }
 0x214   :  { %v291_v11 = vpop.permute.xlu1 %290 }
 0x215   :  { %v296_v16 = vadd.f32 %v291_v11, %v288_v13  ;;  %v324_v19 = vsel %vm55_vm0, %v323_v15, %v319_v18 }
 0x216   :  { %v293_v12 = vpop.permute.xlu0 %292 }
 0x217   :  { %v297_v14 = vadd.f32 %v293_v12, %v289_v9 }
 0x219   :  { %v300_v17 = vrot.slane %v297_v14, 7 }
 0x21b   :  { %v301_v3 = vsel %vm55_vm0, %v300_v17, %v296_v16 }
 0x21c   :  { %304 = vst.msk [vmem:[#allocation2] sm:$0x3] %vm303_vm9, %v301_v3 }
 0x21d   :  { %327 = vst.msk [vmem:[#allocation2] sm:$0x3] %vm326_vm10, %v324_v19 }
 0x21e   :  { %392 = shalt.err (!%p389_p4)
}
 0x21f   :  { %337 = dma.vmem_to_hbm [thread:$0]  %s335_s8, 32, %s536_s3, [#allocation3]  }
 0x220   :  { %401 = dma.done.wait [#allocation3], 32  }
 0x221   :  { %402 = vsyncadd [#allocation3], 4294967264 }
 0x222   :  { %341 = vsyncpa [#allocation3], 1 }

</bundles_post_ra>
